<compile_context>
chip_gen: v6e
topology: v6e:2x2x1
jax: 0.10.0
libtpu: 0.0.40
codegen_flags: <defaults>
</compile_context>

<pallas_src>
import numpy as np
import jax
import jax.numpy as jnp
from jax import lax
from jax.experimental import pallas as pl
from jax.experimental.pallas import tpu as pltpu

LEAKY_SLOPE = 0.01
PN_EPS = 1e-8
FACTORS = [1, 1, 1, 1, 1 / 2, 1 / 4, 1 / 8, 1 / 16, 1 / 32, 1 / 64]


def _eq_scale(cin, k, gain=2.0):
    return (gain / (cin * k * k)) ** 0.5


def _leaky(x):
    return jnp.where(x > 0, x, LEAKY_SLOPE * x)


def _pixelnorm_cm(x):
    # channel-major: channels live on sublanes (axis 0)
    return x * lax.rsqrt(jnp.mean(x * x, axis=0, keepdims=True) + PN_EPS)


# --------------------------------------------------------------------------
# Kernel 1: fused initial layer.
#   ConvTranspose2d(C, C, 4, 1, 0) on the 1x1 noise (== one matmul) + LReLU +
#   Conv2d(C, C, 3, 1, 1) folded into one dense (16C, 16C) matrix + LReLU,
#   optionally + to_rgb[0] (step == 0).  Batch collapsed into M, all matmuls
#   lane-dense, one pallas_call.
# --------------------------------------------------------------------------
def init_stage(params, x_nc, *, to_rgb0=None, compute_dtype=jnp.bfloat16):
    """x_nc: (N, Cin) noise.  Returns (N, C0*16) channel-major activation
    (compute_dtype), or (N, 3*16) f32 RGB when to_rgb0 is given (step 0)."""
    N, C = x_nc.shape
    C0 = params["deconv_w"].shape[1]

    # deconv (Cin, Cout, 4, 4) -> (Cin, Cout*16), output index = o*16 + pixel
    wd = params["deconv_w"].reshape(C, C0 * 16)
    bd = jnp.repeat(params["deconv_b"], 16).reshape(1, C0 * 16)

    # 3x3 / pad-1 conv over the 4x4 image as a dense (16*C0, 16*C0) matrix
    w3 = params["init_conv_w"].reshape(C0, C0, 9)                # (o, i, t)
    A = np.zeros((9, 16, 16), np.float32)                        # A[t, q_out, p_in]
    for dy in (-1, 0, 1):
        for dx in (-1, 0, 1):
            for r in range(4):
                for c in range(4):
                    rr, cc = r + dy, c + dx
                    if 0 <= rr < 4 and 0 <= cc < 4:
                        A[(dy + 1) * 3 + (dx + 1), r * 4 + c, rr * 4 + cc] = 1.0
    wc = jnp.einsum("tqp,oit->ipoq", jnp.asarray(A), w3).reshape(C0 * 16, C0 * 16)
    bc = jnp.repeat(params["init_conv_b"], 16).reshape(1, C0 * 16)

    inputs = [x_nc.astype(compute_dtype), wd.astype(compute_dtype),
              bd.astype(jnp.float32), wc.astype(compute_dtype),
              bc.astype(jnp.float32)]
    if to_rgb0 is None:
        out_shape = jax.ShapeDtypeStruct((N, C0 * 16), compute_dtype)
    else:
        s = _eq_scale(to_rgb0["w"].shape[1], 1)
        wr = jnp.einsum("ci,pq->ipcq", to_rgb0["w"][:, :, 0, 0] * s,
                        jnp.eye(16, dtype=jnp.float32)).reshape(C0 * 16, 3 * 16)
        br = jnp.repeat(to_rgb0["b"], 16).reshape(1, 3 * 16)
        inputs += [wr.astype(compute_dtype), br.astype(jnp.float32)]
        out_shape = jax.ShapeDtypeStruct((N, 3 * 16), jnp.float32)

    def kernel(*refs):
        it = iter(refs)
        x_ref, wd_ref, bd_ref, wc_ref, bc_ref = (next(it) for _ in range(5))
        wr_ref = br_ref = None
        if to_rgb0 is not None:
            wr_ref, br_ref = next(it), next(it)
        o_ref = next(it)
        y = _leaky(jnp.dot(x_ref[...], wd_ref[...],
                           preferred_element_type=jnp.float32) + bd_ref[...])
        z = _leaky(jnp.dot(y.astype(wc_ref.dtype), wc_ref[...],
                           preferred_element_type=jnp.float32) + bc_ref[...])
        if to_rgb0 is None:
            o_ref[...] = z.astype(o_ref.dtype)
        else:
            o_ref[...] = (jnp.dot(z.astype(wr_ref.dtype), wr_ref[...],
                                  preferred_element_type=jnp.float32)
                          + br_ref[...]).astype(o_ref.dtype)

    return pl.pallas_call(
        kernel,
        out_shape=out_shape,
        grid=(1,),
        in_specs=[pl.BlockSpec(a.shape, lambda i: (0, 0)) for a in inputs],
        out_specs=pl.BlockSpec(out_shape.shape, lambda i: (0, 0)),
    )(*inputs)


# --------------------------------------------------------------------------
# Kernel 2: fused progressive block.
#   [K-packed 3x3 conv + bias + LeakyReLU + PixelNorm] x 2, optionally
#   followed by the fused 1x1 to_rgb fade-in + tanh of the final step.
# --------------------------------------------------------------------------
def _pack_conv_weight(w, scale, dtype):
    # OIHW (Cout, Cin, 3, 3) -> (Cout, 9*Cin); K index = t*Cin + ci, t = ky*3+kx.
    cout, cin = w.shape[0], w.shape[1]
    wk = jnp.transpose(w.reshape(cout, cin, 9), (0, 2, 1)).reshape(cout, 9 * cin)
    return (wk * scale).astype(dtype)


def conv_block_stage(x_cm, H, W, conv1, conv2, *, px=True, rgb=None, alpha=0.5,
                     compute_dtype=jnp.bfloat16):
    """x_cm: (N, Cin, M) channel-major flat activation, already 2x-upsampled.
    conv1/conv2: {"w": OIHW, "b": (Cout,), "scale": eqLR scale}.
    rgb: None | {"w_cur","b_cur","scale_cur","w_prev","b_prev","scale_prev"}
    Returns (N, Cout, M) compute_dtype, or (N, 3, M) f32 when rgb is given."""
    N, Cin, M = x_cm.shape
    assert M == H * W
    Cmid, Cout = conv1["w"].shape[0], conv2["w"].shape[0]
    # sublane-tile alignment of the K-packed RHS blocks (bf16 tile = 16 rows)
    assert Cin % 16 == 0 and Cmid % 16 == 0, (Cin, Cmid)
    pad0 = ((W + 1 + 127) // 128) * 128       # zero border >= W+1, lane-aligned
    Mp = M + 2 * pad0

    wk1 = _pack_conv_weight(conv1["w"], conv1["scale"], compute_dtype)
    wk2 = _pack_conv_weight(conv2["w"], conv2["scale"], compute_dtype)
    b1 = conv1["b"].reshape(Cmid, 1).astype(jnp.float32)
    b2 = conv2["b"].reshape(Cout, 1).astype(jnp.float32)

    fade = rgb is not None
    inputs = [x_cm.astype(compute_dtype), wk1, b1, wk2, b2]
    if fade:
        # 1x1 to_rgb convs: fold equalized-LR scale and the fade-in mix into
        # the weights; biases mixed too.  tanh(a*rgb_prev(x_up)+(1-a)*rgb_cur(y))
        wrc = (rgb["w_cur"][:, :, 0, 0]
               * (rgb["scale_cur"] * (1.0 - alpha))).astype(compute_dtype)
        wrp = (rgb["w_prev"][:, :, 0, 0]
               * (rgb["scale_prev"] * alpha)).astype(compute_dtype)
        br = (alpha * rgb["b_prev"] + (1.0 - alpha) * rgb["b_cur"]
              ).reshape(3, 1).astype(jnp.float32)
        inputs += [wrc, br, wrp]
        c_out, out_dtype = 3, jnp.float32
    else:
        c_out, out_dtype = Cout, compute_dtype

    in_specs = [pl.BlockSpec((1, Cin, M), lambda n: (n, 0, 0))]
    in_specs += [pl.BlockSpec(a.shape, lambda n: (0, 0)) for a in inputs[1:]]

    def kernel(*refs):
        it = iter(refs)
        x_ref, wk1_ref, b1_ref, wk2_ref, b2_ref = (next(it) for _ in range(5))
        wrc_ref = br_ref = wrp_ref = None
        if fade:
            wrc_ref, br_ref, wrp_ref = next(it), next(it), next(it)
        o_ref = next(it)
        fp1, rhs1, fp2, rhs2 = next(it), next(it), next(it), next(it)

        # Column-wrap masks for the dx = -1 / +1 taps; computed once and
        # shared by both convs (flat spatial index lives on the lane axis).
        col = lax.broadcasted_iota(jnp.int32, (1, M), 1) % W
        not_left, not_right = col >= 1, col <= W - 2

        # Zero only the pad borders, and only on the first grid step; the
        # interior is fully rewritten below before any shifted read, so stale
        # data from the previous batch element cannot leak into edge taps.
        right0 = ((pad0 + M) // 128) * 128
        @pl.when(pl.program_id(0) == 0)
        def _():
            for fp, c in ((fp1, Cin), (fp2, Cmid)):
                fp[:, :pad0] = jnp.zeros((c, pad0), compute_dtype)
                fp[:, right0:] = jnp.zeros((c, Mp - right0), compute_dtype)

        def conv3x3(fp, rhs, wk_ref, b_ref, cin):
            # Stage the 9 shifted taps as aligned sublane blocks of (9*cin, M)
            # and do a single MXU dot with K packed across all taps.
            for dy in (-1, 0, 1):
                for dx in (-1, 0, 1):
                    t = (dy + 1) * 3 + (dx + 1)
                    off = pad0 + dy * W + dx
                    win = fp[:, off:off + M]
                    if dx == -1:
                        win = jnp.where(not_left, win, 0.0)
                    elif dx == 1:
                        win = jnp.where(not_right, win, 0.0)
                    rhs[t * cin:(t + 1) * cin, :] = win
            return jnp.dot(wk_ref[...], rhs[...],
                           preferred_element_type=jnp.float32) + b_ref[...]

        # conv1 + LeakyReLU (+ PixelNorm); the intermediate never leaves VMEM.
        fp1[:, pad0:pad0 + M] = x_ref[0]
        y = _leaky(conv3x3(fp1, rhs1, wk1_ref, b1_ref, Cin))
        if px:
            y = _pixelnorm_cm(y)
        fp2[:, pad0:pad0 + M] = y.astype(compute_dtype)
        y = _leaky(conv3x3(fp2, rhs2, wk2_ref, b2_ref, Cmid))
        if px:
            y = _pixelnorm_cm(y)

        if not fade:
            o_ref[0] = y.astype(o_ref.dtype)               # lane-dense (Cout, M)
        else:
            rgb_v = (jnp.dot(wrc_ref[...], y.astype(compute_dtype),
                             preferred_element_type=jnp.float32)
                     + jnp.dot(wrp_ref[...], x_ref[0],
                               preferred_element_type=jnp.float32)
                     + br_ref[...])
            o_ref[0] = jnp.tanh(rgb_v).astype(o_ref.dtype)  # lane-dense (3, M)

    return pl.pallas_call(
        kernel,
        out_shape=jax.ShapeDtypeStruct((N, c_out, M), out_dtype),
        grid=(N,),
        in_specs=in_specs,
        out_specs=pl.BlockSpec((1, c_out, M), lambda n: (n, 0, 0)),
        scratch_shapes=[pltpu.VMEM((Cin, Mp), compute_dtype),
                        pltpu.VMEM((9 * Cin, M), compute_dtype),
                        pltpu.VMEM((Cmid, Mp), compute_dtype),
                        pltpu.VMEM((9 * Cmid, M), compute_dtype)],
        compiler_params=pltpu.CompilerParams(
            # TODO(synk): add a second "parallel" row-strip grid axis so both
            # v7x TensorCores get work at batch size 1, and strip-mine M before
            # scaling to real ProGAN channel counts (v7x 64 MiB VMEM budget).
            dimension_semantics=("parallel",),
            vmem_limit_bytes=32 * 1024 * 1024),
    )(*inputs)


# --------------------------------------------------------------------------
# XLA layout glue (no compute)
# --------------------------------------------------------------------------
def _upsample2x_cm(x_cm, h, w):
    # F.interpolate(scale_factor=2, mode='nearest') on channel-major flats.
    # TODO(synk): fold this into the consuming block kernel (stride-2 lane
    # interleave into the padded scratch) to cut block-input HBM reads 4x.
    N, C, M = x_cm.shape
    x = x_cm.reshape(N, C, h, w)
    x = jnp.repeat(jnp.repeat(x, 2, axis=2), 2, axis=3)
    return x.reshape(N, C, 4 * M)


# --------------------------------------------------------------------------
# Parameters (deterministic synthetic init, mirrors Generator.__init__ shapes;
# nonzero biases to exercise the fused bias paths)
# --------------------------------------------------------------------------
def init_generator_params(key, in_channels=32, im_channels=3, num_blocks=5):
    keys = jax.random.split(key, 6 + 6 * num_blocks)
    ki = iter(keys)
    nrm = lambda shape, s=1.0: s * jax.random.normal(next(ki), shape, jnp.float32)
    C = in_channels
    params = {
        "deconv_w": nrm((C, C, 4, 4), 0.05),     # ConvTranspose (Cin, Cout, kh, kw)
        "deconv_b": nrm((C,), 0.05),
        "init_conv_w": nrm((C, C, 3, 3), 0.05),  # Conv (Cout, Cin, kh, kw)
        "init_conv_b": nrm((C,), 0.05),
        "blocks": [],
        "to_rgb": [{"w": nrm((im_channels, C, 1, 1)),
                    "b": nrm((im_channels,), 0.1)}],
    }
    for i in range(num_blocks - 1):
        cin = int(in_channels * FACTORS[i])
        cout = int(in_channels * FACTORS[i + 1])
        params["blocks"].append({
            "w1": nrm((cout, cin, 3, 3)), "b1": nrm((cout,), 0.1),
            "w2": nrm((cout, cout, 3, 3)), "b2": nrm((cout,), 0.1),
        })
        params["to_rgb"].append({"w": nrm((im_channels, cout, 1, 1)),
                                 "b": nrm((im_channels,), 0.1)})
    return params


# --------------------------------------------------------------------------
# Generator forward (Pallas)
# --------------------------------------------------------------------------
def generator_forward(params, x_nchw, step=0, alpha=0.5,
                      compute_dtype=jnp.bfloat16):
    num_blocks = len(params["to_rgb"])
    if step > num_blocks:
        raise IndexError(f"The step can't be greater than {num_blocks}")
    N = x_nchw.shape[0]
    C0 = params["deconv_w"].shape[1]
    x_nc = x_nchw[:, :, 0, 0]

    if step == 0:
        rgb = init_stage(params, x_nc, to_rgb0=params["to_rgb"][0],
                         compute_dtype=compute_dtype)
        return rgb.reshape(N, 3, 4, 4)            # channel-major -> free reshape

    out = init_stage(params, x_nc, compute_dtype=compute_dtype)
    out = out.reshape(N, C0, 16)                  # (N, C, H*W) channel-major
    h = w = 4
    rgb = None
    for i in range(step):
        up = _upsample2x_cm(out, h, w)
        h, w = 2 * h, 2 * w
        blk = params["blocks"][i]
        cin, cmid = blk["w1"].shape[1], blk["w1"].shape[0]
        conv1 = {"w": blk["w1"], "b": blk["b1"], "scale": _eq_scale(cin, 3)}
        conv2 = {"w": blk["w2"], "b": blk["b2"], "scale": _eq_scale(cmid, 3)}
        if i < step - 1:
            out = conv_block_stage(up, h, w, conv1, conv2, px=True,
                                   compute_dtype=compute_dtype)
        else:
            rp, rc = params["to_rgb"][step - 1], params["to_rgb"][step]
            rgb = conv_block_stage(
                up, h, w, conv1, conv2, px=True,
                rgb={"w_cur": rc["w"], "b_cur": rc["b"],
                     "scale_cur": _eq_scale(rc["w"].shape[1], 1),
                     "w_prev": rp["w"], "b_prev": rp["b"],
                     "scale_prev": _eq_scale(rp["w"].shape[1], 1)},
                alpha=alpha, compute_dtype=compute_dtype)
    return rgb.reshape(N, 3, h, w)                # free reshape, NCHW


# --------------------------------------------------------------------------
# Pure-JAX (XLA conv) reference, NCHW like PyTorch
# --------------------------------------------------------------------------
def _conv_ref(x, w, b, pad):
    y = lax.conv_general_dilated(x, w, (1, 1), [(pad, pad), (pad, pad)],
                                 dimension_numbers=("NCHW", "OIHW", "NCHW"))
    return y + b[None, :, None, None]


def _px_ref(x):
    return x / jnp.sqrt(jnp.mean(x * x, axis=1, keepdims=True) + PN_EPS)


def generator_ref(params, x, step=0, alpha=0.5):
    Wd, bd = params["deconv_w"], params["deconv_b"]
    out = jnp.einsum("nc,cohw->nohw", x[:, :, 0, 0], Wd) + bd[None, :, None, None]
    out = _leaky(out)
    out = _leaky(_conv_ref(out, params["init_conv_w"], params["init_conv_b"], 1))
    if step == 0:
        r = params["to_rgb"][0]
        return _conv_ref(out * _eq_scale(r["w"].shape[1], 1), r["w"], r["b"], 0)
    up = out
    for i in range(step):
        up = jnp.repeat(jnp.repeat(out, 2, axis=2), 2, axis=3)
        blk = params["blocks"][i]
        cin, cout = blk["w1"].shape[1], blk["w1"].shape[0]
        h = _px_ref(_leaky(_conv_ref(up * _eq_scale(cin, 3), blk["w1"], blk["b1"], 1)))
        out = _px_ref(_leaky(_conv_ref(h * _eq_scale(cout, 3), blk["w2"], blk["b2"], 1)))
    rp, rc = params["to_rgb"][step - 1], params["to_rgb"][step]
    up_rgb = _conv_ref(up * _eq_scale(rp["w"].shape[1], 1), rp["w"], rp["b"], 0)
    out_rgb = _conv_ref(out * _eq_scale(rc["w"].shape[1], 1), rc["w"], rc["b"], 0)
    return jnp.tanh(alpha * up_rgb + (1 - alpha) * out_rgb)


# --------------------------------------------------------------------------
if __name__ == "__main__":
    in_channels, im_channels, num_blocks = 32, 3, 5
    N = 2

    params = init_generator_params(jax.random.PRNGKey(0),
                                   in_channels, im_channels, num_blocks)
    x = jax.random.normal(jax.random.PRNGKey(1), (N, in_channels, 1, 1),
                          jnp.float32)
    fwd = jax.jit(generator_forward, static_argnames=("step", "compute_dtype"))

    # (step, alpha, compute_dtype, max-abs tolerance vs f32 XLA reference)
    checks = [
        (0, 0.5, jnp.float32, 5e-2),
        (1, 0.7, jnp.float32, 5e-2),
        (2, 0.5, jnp.float32, 5e-2),
        (2, 0.5, jnp.bfloat16, 3e-1),
        (4, 0.3, jnp.bfloat16, 3e-1),
    ]
    for step, alpha, dt, tol in checks:
        y = fwd(params, x, step=step, alpha=alpha, compute_dtype=dt)
        y = jax.block_until_ready(y)
        res = 4 * 2 ** step
        assert y.shape == (N, im_channels, res, res), y.shape
        y_ref = generator_ref(params, x, step=step, alpha=alpha)
        err = float(jnp.max(jnp.abs(y - y_ref)))
        assert err < tol, f"step={step} dtype={dt}: max abs err {err}"

    print("KERNEL_OK")
</pallas_src>

<mosaic_0001>
module attributes {stable_mosaic.version = 11 : i64} {
  func.func @kernel(%arg0: i32, %arg1: memref<2x32xf32, #tpu.memory_space<vmem>>, %arg2: memref<32x512xf32, #tpu.memory_space<vmem>>, %arg3: memref<1x512xf32, #tpu.memory_space<vmem>>, %arg4: memref<512x512xf32, #tpu.memory_space<vmem>>, %arg5: memref<1x512xf32, #tpu.memory_space<vmem>>, %arg6: memref<512x48xf32, #tpu.memory_space<vmem>>, %arg7: memref<1x48xf32, #tpu.memory_space<vmem>>, %arg8: memref<2x48xf32, #tpu.memory_space<vmem>>) attributes {dimension_semantics = [#tpu.dimension_semantics<arbitrary>], iteration_bounds = array<i64: 1>, scalar_prefetch = 0 : i64, scratch_operands = 0 : i64, tpu.core_type = #tpu.core_type<tc>, window_params = [{pipeline_mode = #tpu.pipeline_mode<synchronous>, transform_indices = @transform_0, window_bounds = array<i64: 2, 32>}, {pipeline_mode = #tpu.pipeline_mode<synchronous>, transform_indices = @transform_1, window_bounds = array<i64: 32, 512>}, {pipeline_mode = #tpu.pipeline_mode<synchronous>, transform_indices = @transform_2, window_bounds = array<i64: 1, 512>}, {pipeline_mode = #tpu.pipeline_mode<synchronous>, transform_indices = @transform_3, window_bounds = array<i64: 512, 512>}, {pipeline_mode = #tpu.pipeline_mode<synchronous>, transform_indices = @transform_4, window_bounds = array<i64: 1, 512>}, {pipeline_mode = #tpu.pipeline_mode<synchronous>, transform_indices = @transform_5, window_bounds = array<i64: 512, 48>}, {pipeline_mode = #tpu.pipeline_mode<synchronous>, transform_indices = @transform_6, window_bounds = array<i64: 1, 48>}, {pipeline_mode = #tpu.pipeline_mode<synchronous>, transform_indices = @transform_7, window_bounds = array<i64: 2, 48>}]} {
    %c0 = arith.constant 0 : index
    %c0_0 = arith.constant 0 : index
    %0 = vector.load %arg1[%c0, %c0_0] : memref<2x32xf32, #tpu.memory_space<vmem>>, vector<2x32xf32>
    %c0_1 = arith.constant 0 : index
    %c0_2 = arith.constant 0 : index
    %1 = vector.load %arg2[%c0_1, %c0_2] : memref<32x512xf32, #tpu.memory_space<vmem>>, vector<32x512xf32>
    %cst = arith.constant dense<0.000000e+00> : vector<2x512xf32>
    %2 = tpu.matmul %0, %1, %cst {dimension_numbers = #tpu.dot_dimension_numbers<[1], [0], [0], [1], [0, 0, 1, 1], [], []>} : vector<2x32xf32>, vector<32x512xf32>, vector<2x512xf32> -> vector<2x512xf32>
    %c0_3 = arith.constant 0 : index
    %c0_4 = arith.constant 0 : index
    %3 = vector.load %arg3[%c0_3, %c0_4] : memref<1x512xf32, #tpu.memory_space<vmem>>, vector<1x512xf32>
    %4 = vector.broadcast %3 : vector<1x512xf32> to vector<2x512xf32>
    %5 = arith.addf %2, %4 : vector<2x512xf32>
    %cst_5 = arith.constant 0.000000e+00 : f32
    %6 = vector.broadcast %cst_5 : f32 to vector<2x512xf32>
    %7 = arith.cmpf ogt, %5, %6 : vector<2x512xf32>
    %cst_6 = arith.constant 0.00999999977 : f32
    %8 = vector.broadcast %cst_6 : f32 to vector<2x512xf32>
    %9 = arith.mulf %8, %5 : vector<2x512xf32>
    %10 = arith.select %7, %5, %9 : vector<2x512xi1>, vector<2x512xf32>
    %c0_7 = arith.constant 0 : index
    %c0_8 = arith.constant 0 : index
    %11 = vector.load %arg4[%c0_7, %c0_8] : memref<512x512xf32, #tpu.memory_space<vmem>>, vector<512x512xf32>
    %cst_9 = arith.constant dense<0.000000e+00> : vector<2x512xf32>
    %12 = tpu.matmul %10, %11, %cst_9 {dimension_numbers = #tpu.dot_dimension_numbers<[1], [0], [0], [1], [0, 0, 1, 1], [], []>} : vector<2x512xf32>, vector<512x512xf32>, vector<2x512xf32> -> vector<2x512xf32>
    %c0_10 = arith.constant 0 : index
    %c0_11 = arith.constant 0 : index
    %13 = vector.load %arg5[%c0_10, %c0_11] : memref<1x512xf32, #tpu.memory_space<vmem>>, vector<1x512xf32>
    %14 = vector.broadcast %13 : vector<1x512xf32> to vector<2x512xf32>
    %15 = arith.addf %12, %14 : vector<2x512xf32>
    %cst_12 = arith.constant 0.000000e+00 : f32
    %16 = vector.broadcast %cst_12 : f32 to vector<2x512xf32>
    %17 = arith.cmpf ogt, %15, %16 : vector<2x512xf32>
    %cst_13 = arith.constant 0.00999999977 : f32
    %18 = vector.broadcast %cst_13 : f32 to vector<2x512xf32>
    %19 = arith.mulf %18, %15 : vector<2x512xf32>
    %20 = arith.select %17, %15, %19 : vector<2x512xi1>, vector<2x512xf32>
    %c0_14 = arith.constant 0 : index
    %c0_15 = arith.constant 0 : index
    %21 = vector.load %arg6[%c0_14, %c0_15] : memref<512x48xf32, #tpu.memory_space<vmem>>, vector<512x48xf32>
    %cst_16 = arith.constant dense<0.000000e+00> : vector<2x48xf32>
    %22 = tpu.matmul %20, %21, %cst_16 {dimension_numbers = #tpu.dot_dimension_numbers<[1], [0], [0], [1], [0, 0, 1, 1], [], []>} : vector<2x512xf32>, vector<512x48xf32>, vector<2x48xf32> -> vector<2x48xf32>
    %c0_17 = arith.constant 0 : index
    %c0_18 = arith.constant 0 : index
    %23 = vector.load %arg7[%c0_17, %c0_18] : memref<1x48xf32, #tpu.memory_space<vmem>>, vector<1x48xf32>
    %24 = vector.broadcast %23 : vector<1x48xf32> to vector<2x48xf32>
    %25 = arith.addf %22, %24 : vector<2x48xf32>
    %c0_19 = arith.constant 0 : index
    %c0_20 = arith.constant 0 : index
    %26 = vector.load %arg8[%c0_19, %c0_20] : memref<2x48xf32, #tpu.memory_space<vmem>>, vector<2x48xf32>
    tpu.vector_store %arg8[%c0_19, %c0_20], %25 {strides = array<i32>} : memref<2x48xf32, #tpu.memory_space<vmem>>, vector<2x48xf32>,
    return
  }
  func.func @transform_0(%arg0: i32) -> (i32, i32) {
    %c0_i32 = arith.constant 0 : i32
    %c0_i32_0 = arith.constant 0 : i32
    %c0_i32_1 = arith.constant 0 : i32
    return %c0_i32, %c0_i32_0 : i32, i32
  }
  func.func @transform_1(%arg0: i32) -> (i32, i32) {
    %c0_i32 = arith.constant 0 : i32
    %c0_i32_0 = arith.constant 0 : i32
    %c0_i32_1 = arith.constant 0 : i32
    return %c0_i32, %c0_i32_0 : i32, i32
  }
  func.func @transform_2(%arg0: i32) -> (i32, i32) {
    %c0_i32 = arith.constant 0 : i32
    %c0_i32_0 = arith.constant 0 : i32
    %c0_i32_1 = arith.constant 0 : i32
    return %c0_i32, %c0_i32_0 : i32, i32
  }
  func.func @transform_3(%arg0: i32) -> (i32, i32) {
    %c0_i32 = arith.constant 0 : i32
    %c0_i32_0 = arith.constant 0 : i32
    %c0_i32_1 = arith.constant 0 : i32
    return %c0_i32, %c0_i32_0 : i32, i32
  }
  func.func @transform_4(%arg0: i32) -> (i32, i32) {
    %c0_i32 = arith.constant 0 : i32
    %c0_i32_0 = arith.constant 0 : i32
    %c0_i32_1 = arith.constant 0 : i32
    return %c0_i32, %c0_i32_0 : i32, i32
  }
  func.func @transform_5(%arg0: i32) -> (i32, i32) {
    %c0_i32 = arith.constant 0 : i32
    %c0_i32_0 = arith.constant 0 : i32
    %c0_i32_1 = arith.constant 0 : i32
    return %c0_i32, %c0_i32_0 : i32, i32
  }
  func.func @transform_6(%arg0: i32) -> (i32, i32) {
    %c0_i32 = arith.constant 0 : i32
    %c0_i32_0 = arith.constant 0 : i32
    %c0_i32_1 = arith.constant 0 : i32
    return %c0_i32, %c0_i32_0 : i32, i32
  }
  func.func @transform_7(%arg0: i32) -> (i32, i32) {
    %c0_i32 = arith.constant 0 : i32
    %c0_i32_0 = arith.constant 0 : i32
    %c0_i32_1 = arith.constant 0 : i32
    return %c0_i32, %c0_i32_0 : i32, i32
  }
}

</mosaic_0001>

<bundles_post_ra>
// kernel: generator_forward.1
= control target key start
LH: loop header
LB: loop body
LE: loop exit
PB: predicated region body
PF: predicated region fallthrough
CT: control target
= control target key end

     0   :  { %v1088_v3 = vmov 0.0   ;;  %vm65_vm0 = vcmask 261120   ;;  %vm1008_vm9 = vcmask 386048   ;;  %s2182_s1 = inlined_call_operand.vmem [shape: f32[32,512], index: 1, kind: input, shape index: {}]   ;;  %s2183_s0 = inlined_call_operand.vmem [shape: f32[2,32], index: 0, kind: input, shape index: {}]   ;;  %s2184_s3 = inlined_call_operand.vmem [shape: f32[512,512], index: 3, kind: input, shape index: {}]   ;;  %s2185_s2 = inlined_call_operand.vmem [shape: f32[1,512], index: 2, kind: input, shape index: {}]   ;;  %s2186_s5 = inlined_call_operand.vmem [shape: f32[512,48], index: 5, kind: input, shape index: {}]   ;;  %s2187_s4 = inlined_call_operand.vmem [shape: f32[1,512], index: 4, kind: input, shape index: {}]   ;;  %s2188_s6 = inlined_call_operand.vmem [shape: f32[1,48], index: 6, kind: input, shape index: {}]   ;;  %s2189_s7 = inlined_call_operand.vmem [shape: f32[2,48], index: 7, kind: output, shape index: {}]  }
   0x1   :  { %v40_v0 = vld [vmem:[%s2182_s1 + $0x68] sm:$0xff]  ;;  %v42_v1 = vld [vmem:[%s2182_s1 + $0x78] sm:$0xff]  ;;  %v39_v2 = vld [vmem:[%s2182_s1 + $0x60] sm:$0xff]  ;;  %133 = vmatprep.mubr.f32.mxu0 %v1088_v3  ;;  %204 = vmatprep.mubr.f32.mxu1 %v1088_v3 }
   0x2   :  { %93 = vmatprep.subr.mxu0 %v40_v0  ;;  %164 = vmatprep.subr.mxu1 %v42_v1  ;;  %v41_v4 = vld [vmem:[%s2182_s1 + $0x70] sm:$0xff]  ;;  %v36_v5 = vld [vmem:[%s2182_s1 + $0x48] sm:$0xff]  ;;  %v38_v6 = vld [vmem:[%s2182_s1 + $0x58] sm:$0xff] }
   0x3   :  { %94 = vmatpush1.msra.mxu0 %v39_v2  ;;  %165 = vmatpush1.msra.mxu1 %v41_v4  ;;  %v35_v7 = vld [vmem:[%s2182_s1 + $0x40] sm:$0xff]  ;;  %v37_v8 = vld [vmem:[%s2182_s1 + $0x50] sm:$0xff]  ;;  %v32_v9 = vld [vmem:[%s2182_s1 + $0x28] sm:$0xff] }
   0x4   :  { %95 = vmatprep.subr.mxu0 %v36_v5  ;;  %166 = vmatprep.subr.mxu1 %v38_v6  ;;  %v34_v10 = vld [vmem:[%s2182_s1 + $0x38] sm:$0xff]  ;;  %v31_v11 = vld [vmem:[%s2182_s1 + $0x20] sm:$0xff]  ;;  %v33_v12 = vld [vmem:[%s2182_s1 + $0x30] sm:$0xff] }
   0x5   :  { %96 = vmatpush1.msra.mxu0 %v35_v7  ;;  %167 = vmatpush1.msra.mxu1 %v37_v8  ;;  %v28_v13 = vld [vmem:[%s2182_s1 + $0x8] sm:$0xff]  ;;  %v30_v14 = vld [vmem:[%s2182_s1 + $0x18] sm:$0xff]  ;;  %v27_v15 = vld [vmem:[%s2182_s1] sm:$0xff] }
   0x6   :  { %97 = vmatprep.subr.mxu0 %v32_v9  ;;  %168 = vmatprep.subr.mxu1 %v34_v10  ;;  %v29_v16 = vld [vmem:[%s2182_s1 + $0x10] sm:$0xff]  ;;  %v26_v17 = vld [vmem:[%s2183_s0] sm:$0x3]  ;;  %v284_v18 = vld [vmem:[%s2184_s3 + $0x1e8] sm:$0xff] }
   0x7   :  { %98 = vmatpush1.msra.mxu0 %v31_v11  ;;  %169 = vmatpush1.msra.mxu1 %v33_v12  ;;  %v412_v19 = vld [vmem:[%s2184_s3 + $0x5e8] sm:$0xff]  ;;  %v283_v20 = vld [vmem:[%s2184_s3 + $0x1e0] sm:$0xff] }
   0x8   :  { %99 = vmatprep.subr.mxu0 %v28_v13  ;;  %170 = vmatprep.subr.mxu1 %v30_v14  ;;  %v411_v21 = vld [vmem:[%s2184_s3 + $0x5e0] sm:$0xff]  ;;  %v280_v22 = vld [vmem:[%s2184_s3 + $0x1c8] sm:$0xff] }
   0x9   :  { %100 = vmatpush1.msra.mxu0 %v27_v15  ;;  %171 = vmatpush1.msra.mxu1 %v29_v16  ;;  %v408_v23 = vld [vmem:[%s2184_s3 + $0x5c8] sm:$0xff]  ;;  %v279_v24 = vld [vmem:[%s2184_s3 + $0x1c0] sm:$0xff] }
   0xa   :  { %1014 = vmatmul.mubr.msk.f32.vlgmr.msra.gmra.mxu0 %vm65_vm0, %v26_v17  ;;  %1015 = vmatmul.mubr.msk.f32.vlgmr.msra.gmra.mxu1 %vm65_vm0, %v26_v17  ;;  %v407_v25 = vld [vmem:[%s2184_s3 + $0x5c0] sm:$0xff]  ;;  %v276_v26 = vld [vmem:[%s2184_s3 + $0x1a8] sm:$0xff] }
   0xb   :  { %501 = vmatprep.subr.mxu0 %v284_v18  ;;  %572 = vmatprep.subr.mxu1 %v412_v19  ;;  %v404_v27 = vld [vmem:[%s2184_s3 + $0x5a8] sm:$0xff]  ;;  %v275_v28 = vld [vmem:[%s2184_s3 + $0x1a0] sm:$0xff] }
   0xc   :  { %502 = vmatpush1.msra.mxu0 %v283_v20  ;;  %573 = vmatpush1.msra.mxu1 %v411_v21  ;;  %v403_v29 = vld [vmem:[%s2184_s3 + $0x5a0] sm:$0xff]  ;;  %v272_v30 = vld [vmem:[%s2184_s3 + $0x188] sm:$0xff] }
   0xd   :  { %503 = vmatprep.subr.mxu0 %v280_v22  ;;  %574 = vmatprep.subr.mxu1 %v408_v23  ;;  %v400_v31 = vld [vmem:[%s2184_s3 + $0x588] sm:$0xff]  ;;  %v271_v32 = vld [vmem:[%s2184_s3 + $0x180] sm:$0xff] }
   0xe   :  { %504 = vmatpush1.msra.mxu0 %v279_v24  ;;  %575 = vmatpush1.msra.mxu1 %v407_v25  ;;  %v399_v33 = vld [vmem:[%s2184_s3 + $0x580] sm:$0xff]  ;;  %v268_v34 = vld [vmem:[%s2184_s3 + $0x168] sm:$0xff] }
   0xf   :  { %505 = vmatprep.subr.mxu0 %v276_v26  ;;  %576 = vmatprep.subr.mxu1 %v404_v27  ;;  %v396_v35 = vld [vmem:[%s2184_s3 + $0x568] sm:$0xff]  ;;  %v267_v36 = vld [vmem:[%s2184_s3 + $0x160] sm:$0xff] }
  0x10   :  { %506 = vmatpush1.msra.mxu0 %v275_v28  ;;  %577 = vmatpush1.msra.mxu1 %v403_v29  ;;  %v395_v37 = vld [vmem:[%s2184_s3 + $0x560] sm:$0xff]  ;;  %v264_v38 = vld [vmem:[%s2184_s3 + $0x148] sm:$0xff] }
  0x11   :  { %507 = vmatprep.subr.mxu0 %v272_v30  ;;  %578 = vmatprep.subr.mxu1 %v400_v31  ;;  %v392_v39 = vld [vmem:[%s2184_s3 + $0x548] sm:$0xff]  ;;  %v263_v40 = vld [vmem:[%s2184_s3 + $0x140] sm:$0xff] }
  0x12   :  { %508 = vmatpush1.msra.mxu0 %v271_v32  ;;  %579 = vmatpush1.msra.mxu1 %v399_v33  ;;  %v391_v41 = vld [vmem:[%s2184_s3 + $0x540] sm:$0xff]  ;;  %v260_v42 = vld [vmem:[%s2184_s3 + $0x128] sm:$0xff] }
  0x13   :  { %509 = vmatprep.subr.mxu0 %v268_v34  ;;  %580 = vmatprep.subr.mxu1 %v396_v35  ;;  %v388_v43 = vld [vmem:[%s2184_s3 + $0x528] sm:$0xff]  ;;  %v259_v44 = vld [vmem:[%s2184_s3 + $0x120] sm:$0xff] }
  0x14   :  { %510 = vmatpush1.msra.mxu0 %v267_v36  ;;  %581 = vmatpush1.msra.mxu1 %v395_v37  ;;  %v387_v45 = vld [vmem:[%s2184_s3 + $0x520] sm:$0xff]  ;;  %v256_v46 = vld [vmem:[%s2184_s3 + $0x108] sm:$0xff] }
  0x15   :  { %511 = vmatprep.subr.mxu0 %v264_v38  ;;  %582 = vmatprep.subr.mxu1 %v392_v39  ;;  %v384_v47 = vld [vmem:[%s2184_s3 + $0x508] sm:$0xff]  ;;  %v255_v48 = vld [vmem:[%s2184_s3 + $0x100] sm:$0xff] }
  0x16   :  { %512 = vmatpush1.msra.mxu0 %v263_v40  ;;  %583 = vmatpush1.msra.mxu1 %v391_v41  ;;  %v383_v49 = vld [vmem:[%s2184_s3 + $0x500] sm:$0xff]  ;;  %v252_v50 = vld [vmem:[%s2184_s3 + $0xe8] sm:$0xff] }
  0x17   :  { %513 = vmatprep.subr.mxu0 %v260_v42  ;;  %584 = vmatprep.subr.mxu1 %v388_v43  ;;  %v380_v51 = vld [vmem:[%s2184_s3 + $0x4e8] sm:$0xff]  ;;  %v251_v52 = vld [vmem:[%s2184_s3 + $0xe0] sm:$0xff] }
  0x18   :  { %514 = vmatpush1.msra.mxu0 %v259_v44  ;;  %585 = vmatpush1.msra.mxu1 %v387_v45  ;;  %v379_v53 = vld [vmem:[%s2184_s3 + $0x4e0] sm:$0xff]  ;;  %v248_v54 = vld [vmem:[%s2184_s3 + $0xc8] sm:$0xff] }
  0x19   :  { %515 = vmatprep.subr.mxu0 %v256_v46  ;;  %586 = vmatprep.subr.mxu1 %v384_v47  ;;  %v376_v55 = vld [vmem:[%s2184_s3 + $0x4c8] sm:$0xff]  ;;  %v247_v56 = vld [vmem:[%s2184_s3 + $0xc0] sm:$0xff] }
  0x1a   :  { %516 = vmatpush1.msra.mxu0 %v255_v48  ;;  %587 = vmatpush1.msra.mxu1 %v383_v49  ;;  %v375_v57 = vld [vmem:[%s2184_s3 + $0x4c0] sm:$0xff]  ;;  %v244_v58 = vld [vmem:[%s2184_s3 + $0xa8] sm:$0xff] }
  0x1b   :  { %517 = vmatprep.subr.mxu0 %v252_v50  ;;  %588 = vmatprep.subr.mxu1 %v380_v51  ;;  %v372_v59 = vld [vmem:[%s2184_s3 + $0x4a8] sm:$0xff]  ;;  %v243_v60 = vld [vmem:[%s2184_s3 + $0xa0] sm:$0xff] }
  0x1c   :  { %518 = vmatpush1.msra.mxu0 %v251_v52  ;;  %589 = vmatpush1.msra.mxu1 %v379_v53  ;;  %v371_v61 = vld [vmem:[%s2184_s3 + $0x4a0] sm:$0xff]  ;;  %v240_v62 = vld [vmem:[%s2184_s3 + $0x88] sm:$0xff] }
  0x1d   :  { %519 = vmatprep.subr.mxu0 %v248_v54  ;;  %590 = vmatprep.subr.mxu1 %v376_v55  ;;  %v368_v63 = vld [vmem:[%s2184_s3 + $0x488] sm:$0xff]  ;;  %v239_v0 = vld [vmem:[%s2184_s3 + $0x80] sm:$0xff] }
  0x1e   :  { %520 = vmatpush1.msra.mxu0 %v247_v56  ;;  %591 = vmatpush1.msra.mxu1 %v375_v57  ;;  %v367_v1 = vld [vmem:[%s2184_s3 + $0x480] sm:$0xff]  ;;  %v236_v2 = vld [vmem:[%s2184_s3 + $0x68] sm:$0xff] }
  0x1f   :  { %521 = vmatprep.subr.mxu0 %v244_v58  ;;  %592 = vmatprep.subr.mxu1 %v372_v59  ;;  %v364_v3 = vld [vmem:[%s2184_s3 + $0x468] sm:$0xff]  ;;  %v235_v4 = vld [vmem:[%s2184_s3 + $0x60] sm:$0xff] }
  0x20   :  { %522 = vmatpush1.msra.mxu0 %v243_v60  ;;  %593 = vmatpush1.msra.mxu1 %v371_v61  ;;  %v363_v5 = vld [vmem:[%s2184_s3 + $0x460] sm:$0xff]  ;;  %v232_v6 = vld [vmem:[%s2184_s3 + $0x48] sm:$0xff] }
  0x21   :  { %523 = vmatprep.subr.mxu0 %v240_v62  ;;  %594 = vmatprep.subr.mxu1 %v368_v63  ;;  %v360_v7 = vld [vmem:[%s2184_s3 + $0x448] sm:$0xff]  ;;  %v231_v8 = vld [vmem:[%s2184_s3 + $0x40] sm:$0xff] }
  0x22   :  { %524 = vmatpush1.msra.mxu0 %v239_v0  ;;  %595 = vmatpush1.msra.mxu1 %v367_v1  ;;  %v359_v9 = vld [vmem:[%s2184_s3 + $0x440] sm:$0xff]  ;;  %v228_v10 = vld [vmem:[%s2184_s3 + $0x28] sm:$0xff] }
  0x23   :  { %525 = vmatprep.subr.mxu0 %v236_v2  ;;  %596 = vmatprep.subr.mxu1 %v364_v3  ;;  %v356_v11 = vld [vmem:[%s2184_s3 + $0x428] sm:$0xff]  ;;  %v227_v12 = vld [vmem:[%s2184_s3 + $0x20] sm:$0xff] }
  0x24   :  { %526 = vmatpush1.msra.mxu0 %v235_v4  ;;  %597 = vmatpush1.msra.mxu1 %v363_v5  ;;  %v355_v13 = vld [vmem:[%s2184_s3 + $0x420] sm:$0xff]  ;;  %v224_v14 = vld [vmem:[%s2184_s3 + $0x8] sm:$0xff] }
  0x25   :  { %527 = vmatprep.subr.mxu0 %v232_v6  ;;  %598 = vmatprep.subr.mxu1 %v360_v7  ;;  %v352_v15 = vld [vmem:[%s2184_s3 + $0x408] sm:$0xff]  ;;  %v223_v16 = vld [vmem:[%s2184_s3] sm:$0xff] }
  0x26   :  { %528 = vmatpush1.msra.mxu0 %v231_v8  ;;  %599 = vmatpush1.msra.mxu1 %v359_v9  ;;  %v351_v17 = vld [vmem:[%s2184_s3 + $0x400] sm:$0xff]  ;;  %v348_v18 = vld [vmem:[%s2184_s3 + $0x3e8] sm:$0xff] }
  0x27   :  { %529 = vmatprep.subr.mxu0 %v228_v10  ;;  %600 = vmatprep.subr.mxu1 %v356_v11  ;;  %v476_v19 = vld [vmem:[%s2184_s3 + $0x7e8] sm:$0xff]  ;;  %v347_v20 = vld [vmem:[%s2184_s3 + $0x3e0] sm:$0xff] }
  0x28   :  { %530 = vmatpush1.msra.mxu0 %v227_v12  ;;  %601 = vmatpush1.msra.mxu1 %v355_v13  ;;  %v475_v21 = vld [vmem:[%s2184_s3 + $0x7e0] sm:$0xff]  ;;  %v344_v22 = vld [vmem:[%s2184_s3 + $0x3c8] sm:$0xff] }
  0x29   :  { %531 = vmatprep.subr.mxu0 %v224_v14  ;;  %602 = vmatprep.subr.mxu1 %v352_v15  ;;  %v472_v23 = vld [vmem:[%s2184_s3 + $0x7c8] sm:$0xff]  ;;  %v343_v24 = vld [vmem:[%s2184_s3 + $0x3c0] sm:$0xff] }
  0x2a   :  { %532 = vmatpush1.msra.mxu0 %v223_v16  ;;  %603 = vmatpush1.msra.mxu1 %v351_v17  ;;  %v471_v25 = vld [vmem:[%s2184_s3 + $0x7c0] sm:$0xff]  ;;  %v340_v26 = vld [vmem:[%s2184_s3 + $0x3a8] sm:$0xff] }
  0x2b   :  { %533 = vmatprep.subr.mxu0 %v348_v18  ;;  %604 = vmatprep.subr.mxu1 %v476_v19  ;;  %v468_v27 = vld [vmem:[%s2184_s3 + $0x7a8] sm:$0xff]  ;;  %v339_v28 = vld [vmem:[%s2184_s3 + $0x3a0] sm:$0xff]  ;;  %v286_v18 = vld [vmem:[%s2184_s3 + $0x1f8] sm:$0xff] }
  0x2c   :  { %534 = vmatpush2.msra.mxu0 %v347_v20  ;;  %605 = vmatpush2.msra.mxu1 %v475_v21  ;;  %v467_v29 = vld [vmem:[%s2184_s3 + $0x7a0] sm:$0xff]  ;;  %v336_v30 = vld [vmem:[%s2184_s3 + $0x388] sm:$0xff]  ;;  %v414_v19 = vld [vmem:[%s2184_s3 + $0x5f8] sm:$0xff]  ;;  %v45_v20 = vlaneseq }
  0x2d   :  { %535 = vmatprep.subr.mxu0 %v344_v22  ;;  %606 = vmatprep.subr.mxu1 %v472_v23  ;;  %v464_v31 = vld [vmem:[%s2184_s3 + $0x788] sm:$0xff]  ;;  %v335_v32 = vld [vmem:[%s2184_s3 + $0x380] sm:$0xff] }
  0x2e   :  { %536 = vmatpush2.msra.mxu0 %v343_v24  ;;  %607 = vmatpush2.msra.mxu1 %v471_v25  ;;  %v463_v33 = vld [vmem:[%s2184_s3 + $0x780] sm:$0xff]  ;;  %v332_v34 = vld [vmem:[%s2184_s3 + $0x368] sm:$0xff]  ;;  %v1570_v21 = vshrl.u32 %v45_v20, 7  ;;  %v377_v20 = vld [vmem:[%s2184_s3 + $0x4d0] sm:$0xff] }
  0x2f   :  { %537 = vmatprep.subr.mxu0 %v340_v26  ;;  %608 = vmatprep.subr.mxu1 %v468_v27  ;;  %v460_v35 = vld [vmem:[%s2184_s3 + $0x768] sm:$0xff]  ;;  %v331_v36 = vld [vmem:[%s2184_s3 + $0x360] sm:$0xff] }
  0x30   :  { %538 = vmatpush2.msra.mxu0 %v339_v28  ;;  %609 = vmatpush2.msra.mxu1 %v467_v29  ;;  %v459_v37 = vld [vmem:[%s2184_s3 + $0x760] sm:$0xff]  ;;  %v328_v38 = vld [vmem:[%s2184_s3 + $0x348] sm:$0xff]  ;;  %v47_v22 = vsub.s32 0, %v1570_v21  ;;  %v55_v23 = vsub.s32 2, %v1570_v21  ;;  %v51_v25 = vsub.s32 1, %v1570_v21  ;;  %v59_v26 = vsub.s32 3, %v1570_v21 }
  0x31   :  { %539 = vmatprep.subr.mxu0 %v336_v30  ;;  %610 = vmatprep.subr.mxu1 %v464_v31  ;;  %v456_v39 = vld [vmem:[%s2184_s3 + $0x748] sm:$0xff]  ;;  %v327_v40 = vld [vmem:[%s2184_s3 + $0x340] sm:$0xff] }
  0x32   :  { %540 = vmatpush2.msra.mxu0 %v335_v32  ;;  %611 = vmatpush2.msra.mxu1 %v463_v33  ;;  %v455_v41 = vld [vmem:[%s2184_s3 + $0x740] sm:$0xff]  ;;  %v324_v42 = vld [vmem:[%s2184_s3 + $0x328] sm:$0xff] }
  0x33   :  { %541 = vmatprep.subr.mxu0 %v332_v34  ;;  %612 = vmatprep.subr.mxu1 %v460_v35  ;;  %v452_v43 = vld [vmem:[%s2184_s3 + $0x728] sm:$0xff]  ;;  %v323_v44 = vld [vmem:[%s2184_s3 + $0x320] sm:$0xff] }
  0x34   :  { %542 = vmatpush2.msra.mxu0 %v331_v36  ;;  %613 = vmatpush2.msra.mxu1 %v459_v37  ;;  %v451_v45 = vld [vmem:[%s2184_s3 + $0x720] sm:$0xff]  ;;  %v320_v46 = vld [vmem:[%s2184_s3 + $0x308] sm:$0xff] }
  0x35   :  { %543 = vmatprep.subr.mxu0 %v328_v38  ;;  %614 = vmatprep.subr.mxu1 %v456_v39  ;;  %v448_v47 = vld [vmem:[%s2184_s3 + $0x708] sm:$0xff]  ;;  %v319_v48 = vld [vmem:[%s2184_s3 + $0x300] sm:$0xff] }
  0x36   :  { %544 = vmatpush2.msra.mxu0 %v327_v40  ;;  %615 = vmatpush2.msra.mxu1 %v455_v41  ;;  %v447_v49 = vld [vmem:[%s2184_s3 + $0x700] sm:$0xff]  ;;  %v316_v50 = vld [vmem:[%s2184_s3 + $0x2e8] sm:$0xff] }
  0x37   :  { %545 = vmatprep.subr.mxu0 %v324_v42  ;;  %616 = vmatprep.subr.mxu1 %v452_v43  ;;  %v444_v51 = vld [vmem:[%s2184_s3 + $0x6e8] sm:$0xff]  ;;  %v315_v52 = vld [vmem:[%s2184_s3 + $0x2e0] sm:$0xff] }
  0x38   :  { %546 = vmatpush2.msra.mxu0 %v323_v44  ;;  %617 = vmatpush2.msra.mxu1 %v451_v45  ;;  %v443_v53 = vld [vmem:[%s2184_s3 + $0x6e0] sm:$0xff]  ;;  %v312_v54 = vld [vmem:[%s2184_s3 + $0x2c8] sm:$0xff]  ;;  %v285_v45 = vld [vmem:[%s2184_s3 + $0x1f0] sm:$0xff] }
  0x39   :  { %547 = vmatprep.subr.mxu0 %v320_v46  ;;  %618 = vmatprep.subr.mxu1 %v448_v47  ;;  %v440_v55 = vld [vmem:[%s2184_s3 + $0x6c8] sm:$0xff]  ;;  %v311_v56 = vld [vmem:[%s2184_s3 + $0x2c0] sm:$0xff]  ;;  %v413_v46 = vld [vmem:[%s2184_s3 + $0x5f0] sm:$0xff] }
  0x3a   :  { %548 = vmatpush2.msra.mxu0 %v319_v48  ;;  %619 = vmatpush2.msra.mxu1 %v447_v49  ;;  %v439_v57 = vld [vmem:[%s2184_s3 + $0x6c0] sm:$0xff]  ;;  %v308_v58 = vld [vmem:[%s2184_s3 + $0x2a8] sm:$0xff]  ;;  %v282_v49 = vld [vmem:[%s2184_s3 + $0x1d8] sm:$0xff] }
  0x3b   :  { %549 = vmatprep.subr.mxu0 %v316_v50  ;;  %620 = vmatprep.subr.mxu1 %v444_v51  ;;  %v436_v59 = vld [vmem:[%s2184_s3 + $0x6a8] sm:$0xff]  ;;  %v307_v60 = vld [vmem:[%s2184_s3 + $0x2a0] sm:$0xff]  ;;  %v410_v50 = vld [vmem:[%s2184_s3 + $0x5d8] sm:$0xff] }
  0x3c   :  { %550 = vmatpush2.msra.mxu0 %v315_v52  ;;  %621 = vmatpush2.msra.mxu1 %v443_v53  ;;  %v435_v61 = vld [vmem:[%s2184_s3 + $0x6a0] sm:$0xff]  ;;  %v304_v62 = vld [vmem:[%s2184_s3 + $0x288] sm:$0xff]  ;;  %v281_v51 = vld [vmem:[%s2184_s3 + $0x1d0] sm:$0xff] }
  0x3d   :  { %551 = vmatprep.subr.mxu0 %v312_v54  ;;  %622 = vmatprep.subr.mxu1 %v440_v55  ;;  %v432_v63 = vld [vmem:[%s2184_s3 + $0x688] sm:$0xff]  ;;  %v303_v0 = vld [vmem:[%s2184_s3 + $0x280] sm:$0xff]  ;;  %v409_v52 = vld [vmem:[%s2184_s3 + $0x5d0] sm:$0xff] }
  0x3e   :  { %552 = vmatpush2.msra.mxu0 %v311_v56  ;;  %623 = vmatpush2.msra.mxu1 %v439_v57  ;;  %v431_v1 = vld [vmem:[%s2184_s3 + $0x680] sm:$0xff]  ;;  %v300_v2 = vld [vmem:[%s2184_s3 + $0x268] sm:$0xff]  ;;  %v278_v53 = vld [vmem:[%s2184_s3 + $0x1b8] sm:$0xff] }
  0x3f   :  { %553 = vmatprep.subr.mxu0 %v308_v58  ;;  %624 = vmatprep.subr.mxu1 %v436_v59  ;;  %v428_v3 = vld [vmem:[%s2184_s3 + $0x668] sm:$0xff]  ;;  %v299_v4 = vld [vmem:[%s2184_s3 + $0x260] sm:$0xff]  ;;  %v406_v54 = vld [vmem:[%s2184_s3 + $0x5b8] sm:$0xff] }
  0x40   :  { %554 = vmatpush2.msra.mxu0 %v307_v60  ;;  %625 = vmatpush2.msra.mxu1 %v435_v61  ;;  %v427_v5 = vld [vmem:[%s2184_s3 + $0x660] sm:$0xff]  ;;  %v296_v6 = vld [vmem:[%s2184_s3 + $0x248] sm:$0xff]  ;;  %v277_v55 = vld [vmem:[%s2184_s3 + $0x1b0] sm:$0xff] }
  0x41   :  { %555 = vmatprep.subr.mxu0 %v304_v62  ;;  %626 = vmatprep.subr.mxu1 %v432_v63  ;;  %v424_v7 = vld [vmem:[%s2184_s3 + $0x648] sm:$0xff]  ;;  %v295_v8 = vld [vmem:[%s2184_s3 + $0x240] sm:$0xff]  ;;  %v405_v56 = vld [vmem:[%s2184_s3 + $0x5b0] sm:$0xff] }
  0x42   :  { %556 = vmatpush2.msra.mxu0 %v303_v0  ;;  %627 = vmatpush2.msra.mxu1 %v431_v1  ;;  %v423_v9 = vld [vmem:[%s2184_s3 + $0x640] sm:$0xff]  ;;  %v292_v10 = vld [vmem:[%s2184_s3 + $0x228] sm:$0xff]  ;;  %v274_v57 = vld [vmem:[%s2184_s3 + $0x198] sm:$0xff] }
  0x43   :  { %557 = vmatprep.subr.mxu0 %v300_v2  ;;  %628 = vmatprep.subr.mxu1 %v428_v3  ;;  %v420_v11 = vld [vmem:[%s2184_s3 + $0x628] sm:$0xff]  ;;  %v291_v12 = vld [vmem:[%s2184_s3 + $0x220] sm:$0xff]  ;;  %v402_v58 = vld [vmem:[%s2184_s3 + $0x598] sm:$0xff] }
  0x44   :  { %558 = vmatpush2.msra.mxu0 %v299_v4  ;;  %629 = vmatpush2.msra.mxu1 %v427_v5  ;;  %v419_v13 = vld [vmem:[%s2184_s3 + $0x620] sm:$0xff]  ;;  %v288_v14 = vld [vmem:[%s2184_s3 + $0x208] sm:$0xff]  ;;  %v273_v59 = vld [vmem:[%s2184_s3 + $0x190] sm:$0xff] }
  0x45   :  { %559 = vmatprep.subr.mxu0 %v296_v6  ;;  %630 = vmatprep.subr.mxu1 %v424_v7  ;;  %v416_v15 = vld [vmem:[%s2184_s3 + $0x608] sm:$0xff]  ;;  %v287_v16 = vld [vmem:[%s2184_s3 + $0x200] sm:$0xff]  ;;  %v401_v60 = vld [vmem:[%s2184_s3 + $0x590] sm:$0xff] }
  0x46   :  { %560 = vmatpush2.msra.mxu0 %v295_v8  ;;  %631 = vmatpush2.msra.mxu1 %v423_v9  ;;  %v415_v17 = vld [vmem:[%s2184_s3 + $0x600] sm:$0xff]  ;;  %v270_v61 = vld [vmem:[%s2184_s3 + $0x178] sm:$0xff]  ;;  %v269_v63 = vld [vmem:[%s2184_s3 + $0x170] sm:$0xff] }
  0x47   :  { %561 = vmatprep.subr.mxu0 %v292_v10  ;;  %632 = vmatprep.subr.mxu1 %v420_v11  ;;  %v43_v24 = vld [vmem:[%s2185_s2] sm:$0xf]  ;;  %v398_v62 = vld [vmem:[%s2184_s3 + $0x578] sm:$0xff]  ;;  %v397_v0 = vld [vmem:[%s2184_s3 + $0x570] sm:$0xff] }
  0x48   :  { %562 = vmatpush2.msra.mxu0 %v291_v12  ;;  %633 = vmatpush2.msra.mxu1 %v419_v13  ;;  %v48_v27 = vrot.slane %v43_v24, %v47_v22  ;;  %v56_v28 = vrot.slane %v43_v24, %v55_v23  ;;  %v52_v31 = vrot.slane %v43_v24, %v51_v25  ;;  %v266_v1 = vld [vmem:[%s2184_s3 + $0x158] sm:$0xff]  ;;  %v265_v3 = vld [vmem:[%s2184_s3 + $0x150] sm:$0xff] }
  0x49   :  { %563 = vmatprep.subr.mxu0 %v288_v14  ;;  %634 = vmatprep.subr.mxu1 %v416_v15  ;;  %v60_v32 = vrot.slane %v43_v24, %v59_v26  ;;  %v394_v2 = vld [vmem:[%s2184_s3 + $0x558] sm:$0xff]  ;;  %v393_v4 = vld [vmem:[%s2184_s3 + $0x550] sm:$0xff] }
  0x4a   :  { %564 = vmatpush2.msra.mxu0 %v287_v16  ;;  %635 = vmatpush2.msra.mxu1 %v415_v17  ;;  %v262_v5 = vld [vmem:[%s2184_s3 + $0x138] sm:$0xff]  ;;  %v261_v7 = vld [vmem:[%s2184_s3 + $0x130] sm:$0xff] }
  0x4b   :  { %643 = vmatprep.subr.mxu0 %v286_v18  ;;  %714 = vmatprep.subr.mxu1 %v414_v19  ;;  %v390_v6 = vld [vmem:[%s2184_s3 + $0x538] sm:$0xff]  ;;  %v389_v8 = vld [vmem:[%s2184_s3 + $0x530] sm:$0xff] }
  0x4c   :  { %v258_v9 = vld [vmem:[%s2184_s3 + $0x118] sm:$0xff]  ;;  %v257_v11 = vld [vmem:[%s2184_s3 + $0x110] sm:$0xff] }
  0x4d   :  { %v386_v10 = vld [vmem:[%s2184_s3 + $0x518] sm:$0xff]  ;;  %v385_v12 = vld [vmem:[%s2184_s3 + $0x510] sm:$0xff] }
  0x4e   :  { %v254_v13 = vld [vmem:[%s2184_s3 + $0xf8] sm:$0xff]  ;;  %v253_v15 = vld [vmem:[%s2184_s3 + $0xf0] sm:$0xff] }
  0x4f   :  { %v382_v14 = vld [vmem:[%s2184_s3 + $0x4f8] sm:$0xff]  ;;  %v381_v16 = vld [vmem:[%s2184_s3 + $0x4f0] sm:$0xff] }
  0x50   :  { %v250_v17 = vld [vmem:[%s2184_s3 + $0xd8] sm:$0xff]  ;;  %v249_v19 = vld [vmem:[%s2184_s3 + $0xd0] sm:$0xff] }
  0x51   :  { %v378_v18 = vld [vmem:[%s2184_s3 + $0x4d8] sm:$0xff] }
  0x52   :  { %v246_v24 = vld [vmem:[%s2184_s3 + $0xb8] sm:$0xff] }
  0xca   :  { %v135_v29 = vpop.f32.mrf.mxu0  ;;  %v206_v30 = vpop.f32.mrf.mxu1 }
  0xcb   :  { %v136_v33 = vadd.f32 %v135_v29, %v48_v27  ;;  %v207_v34 = vadd.f32 %v206_v30, %v56_v28  ;;  %v374_v27 = vld [vmem:[%s2184_s3 + $0x4b8] sm:$0xff]  ;;  %v245_v28 = vld [vmem:[%s2184_s3 + $0xb0] sm:$0xff] }
  0xcc   :  { %v137_v35 = vpop.f32.mrf.mxu0  ;;  %v208_v36 = vpop.f32.mrf.mxu1  ;;  %v373_v29 = vld [vmem:[%s2184_s3 + $0x4b0] sm:$0xff]  ;;  %v242_v30 = vld [vmem:[%s2184_s3 + $0x98] sm:$0xff] }
  0xcd   :  { %v138_v37 = vadd.f32 %v137_v35, %v52_v31  ;;  %v209_v38 = vadd.f32 %v208_v36, %v60_v32  ;;  %vm211_vm1 = vcmp.gt.f32.partialorder %v136_v33, 0.0  ;;  %v215_v39 = vmul.f32 0.01, %v136_v33  ;;  %v370_v31 = vld [vmem:[%s2184_s3 + $0x498] sm:$0xff]  ;;  %v241_v32 = vld [vmem:[%s2184_s3 + $0x90] sm:$0xff] }
  0xce   :  { %vm213_vm2 = vcmp.gt.f32.partialorder %v207_v34, 0.0  ;;  %v217_v40 = vmul.f32 0.01, %v207_v34  ;;  %v366_v35 = vld [vmem:[%s2184_s3 + $0x478] sm:$0xff]  ;;  %v237_v36 = vld [vmem:[%s2184_s3 + $0x70] sm:$0xff] }
  0xcf   :  { %v216_v41 = vmul.f32 0.01, %v138_v37  ;;  %v218_v42 = vmul.f32 0.01, %v209_v38  ;;  %vm212_vm3 = vcmp.gt.f32.partialorder %v138_v37, 0.0  ;;  %vm214_vm4 = vcmp.gt.f32.partialorder %v209_v38, 0.0 }
  0xd0   :  { %v1593_v47 = vsel %vm211_vm1, %v136_v33, %v215_v39  ;;  %v1595_v48 = vsel %vm213_vm2, %v207_v34, %v217_v40  ;;  %v369_v33 = vld [vmem:[%s2184_s3 + $0x490] sm:$0xff]  ;;  %v238_v34 = vld [vmem:[%s2184_s3 + $0x78] sm:$0xff] }
  0xd1   :  { %v220_v43 = vsel %vm212_vm3, %v138_v37, %v216_v41  ;;  %v222_v44 = vsel %vm214_vm4, %v209_v38, %v218_v42  ;;  %v365_v37 = vld [vmem:[%s2184_s3 + $0x470] sm:$0xff]  ;;  %v234_v38 = vld [vmem:[%s2184_s3 + $0x58] sm:$0xff] }
  0xd2   :  { %565 = vmatprep.mubr.f32.mxu0 %v220_v43  ;;  %636 = vmatprep.mubr.f32.mxu1 %v222_v44  ;;  %v362_v39 = vld [vmem:[%s2184_s3 + $0x458] sm:$0xff]  ;;  %v233_v40 = vld [vmem:[%s2184_s3 + $0x50] sm:$0xff] }
  0xd3   :  { %566 = vmatmul.mubr.f32.vlgmr.msra.gmra.mxu0 %v1593_v47  ;;  %637 = vmatmul.mubr.f32.vlgmr.msra.gmra.mxu1 %v1595_v48  ;;  %v361_v41 = vld [vmem:[%s2184_s3 + $0x450] sm:$0xff]  ;;  %v230_v42 = vld [vmem:[%s2184_s3 + $0x38] sm:$0xff] }
  0xd4   :  { %644 = vmatpush1.msra.mxu0 %v285_v45  ;;  %715 = vmatpush1.msra.mxu1 %v413_v46  ;;  %v357_v45 = vld [vmem:[%s2184_s3 + $0x430] sm:$0xff]  ;;  %v226_v46 = vld [vmem:[%s2184_s3 + $0x18] sm:$0xff] }
  0xd5   :  { %645 = vmatprep.subr.mxu0 %v282_v49  ;;  %707 = vmatprep.mubr.f32.mxu0 %v220_v43  ;;  %v358_v43 = vld [vmem:[%s2184_s3 + $0x438] sm:$0xff] }
  0xd6   :  { %716 = vmatprep.subr.mxu1 %v410_v50  ;;  %778 = vmatprep.mubr.f32.mxu1 %v222_v44  ;;  %v229_v44 = vld [vmem:[%s2184_s3 + $0x30] sm:$0xff]  ;;  %v354_v49 = vld [vmem:[%s2184_s3 + $0x418] sm:$0xff] }
  0xd7   :  { %646 = vmatpush1.msra.mxu0 %v281_v51  ;;  %717 = vmatpush1.msra.mxu1 %v409_v52  ;;  %v225_v50 = vld [vmem:[%s2184_s3 + $0x10] sm:$0xff]  ;;  %v350_v52 = vld [vmem:[%s2184_s3 + $0x3f8] sm:$0xff] }
  0xd8   :  { %647 = vmatprep.subr.mxu0 %v278_v53  ;;  %718 = vmatprep.subr.mxu1 %v406_v54  ;;  %v353_v51 = vld [vmem:[%s2184_s3 + $0x410] sm:$0xff]  ;;  %v478_v53 = vld [vmem:[%s2184_s3 + $0x7f8] sm:$0xff] }
  0xd9   :  { %648 = vmatpush1.msra.mxu0 %v277_v55  ;;  %719 = vmatpush1.msra.mxu1 %v405_v56  ;;  %v349_v54 = vld [vmem:[%s2184_s3 + $0x3f0] sm:$0xff]  ;;  %v346_v56 = vld [vmem:[%s2184_s3 + $0x3d8] sm:$0xff] }
  0xda   :  { %649 = vmatprep.subr.mxu0 %v274_v57  ;;  %720 = vmatprep.subr.mxu1 %v402_v58  ;;  %v477_v55 = vld [vmem:[%s2184_s3 + $0x7f0] sm:$0xff]  ;;  %v474_v57 = vld [vmem:[%s2184_s3 + $0x7d8] sm:$0xff] }
  0xdb   :  { %650 = vmatpush1.msra.mxu0 %v273_v59  ;;  %721 = vmatpush1.msra.mxu1 %v401_v60  ;;  %v345_v58 = vld [vmem:[%s2184_s3 + $0x3d0] sm:$0xff]  ;;  %v342_v60 = vld [vmem:[%s2184_s3 + $0x3b8] sm:$0xff] }
  0xdc   :  { %651 = vmatprep.subr.mxu0 %v270_v61  ;;  %722 = vmatprep.subr.mxu1 %v398_v62  ;;  %v473_v59 = vld [vmem:[%s2184_s3 + $0x7d0] sm:$0xff]  ;;  %v470_v61 = vld [vmem:[%s2184_s3 + $0x7b8] sm:$0xff] }
  0xdd   :  { %652 = vmatpush1.msra.mxu0 %v269_v63  ;;  %723 = vmatpush1.msra.mxu1 %v397_v0  ;;  %v341_v62 = vld [vmem:[%s2184_s3 + $0x3b0] sm:$0xff]  ;;  %v338_v0 = vld [vmem:[%s2184_s3 + $0x398] sm:$0xff] }
  0xde   :  { %653 = vmatprep.subr.mxu0 %v266_v1  ;;  %724 = vmatprep.subr.mxu1 %v394_v2  ;;  %v469_v63 = vld [vmem:[%s2184_s3 + $0x7b0] sm:$0xff]  ;;  %v466_v1 = vld [vmem:[%s2184_s3 + $0x798] sm:$0xff] }
  0xdf   :  { %654 = vmatpush1.msra.mxu0 %v265_v3  ;;  %725 = vmatpush1.msra.mxu1 %v393_v4  ;;  %v337_v2 = vld [vmem:[%s2184_s3 + $0x390] sm:$0xff]  ;;  %v334_v4 = vld [vmem:[%s2184_s3 + $0x378] sm:$0xff] }
  0xe0   :  { %655 = vmatprep.subr.mxu0 %v262_v5  ;;  %726 = vmatprep.subr.mxu1 %v390_v6  ;;  %v465_v3 = vld [vmem:[%s2184_s3 + $0x790] sm:$0xff]  ;;  %v462_v5 = vld [vmem:[%s2184_s3 + $0x778] sm:$0xff] }
  0xe1   :  { %656 = vmatpush1.msra.mxu0 %v261_v7  ;;  %727 = vmatpush1.msra.mxu1 %v389_v8  ;;  %v333_v6 = vld [vmem:[%s2184_s3 + $0x370] sm:$0xff]  ;;  %v330_v8 = vld [vmem:[%s2184_s3 + $0x358] sm:$0xff] }
  0xe2   :  { %657 = vmatprep.subr.mxu0 %v258_v9  ;;  %728 = vmatprep.subr.mxu1 %v386_v10  ;;  %v461_v7 = vld [vmem:[%s2184_s3 + $0x770] sm:$0xff]  ;;  %v458_v9 = vld [vmem:[%s2184_s3 + $0x758] sm:$0xff] }
  0xe3   :  { %658 = vmatpush1.msra.mxu0 %v257_v11  ;;  %729 = vmatpush1.msra.mxu1 %v385_v12  ;;  %v329_v10 = vld [vmem:[%s2184_s3 + $0x350] sm:$0xff]  ;;  %v326_v12 = vld [vmem:[%s2184_s3 + $0x338] sm:$0xff] }
  0xe4   :  { %659 = vmatprep.subr.mxu0 %v254_v13  ;;  %730 = vmatprep.subr.mxu1 %v382_v14  ;;  %v457_v11 = vld [vmem:[%s2184_s3 + $0x750] sm:$0xff]  ;;  %v454_v13 = vld [vmem:[%s2184_s3 + $0x738] sm:$0xff] }
  0xe5   :  { %660 = vmatpush1.msra.mxu0 %v253_v15  ;;  %731 = vmatpush1.msra.mxu1 %v381_v16  ;;  %v325_v14 = vld [vmem:[%s2184_s3 + $0x330] sm:$0xff]  ;;  %v322_v16 = vld [vmem:[%s2184_s3 + $0x318] sm:$0xff] }
  0xe6   :  { %661 = vmatprep.subr.mxu0 %v250_v17  ;;  %732 = vmatprep.subr.mxu1 %v378_v18  ;;  %v453_v15 = vld [vmem:[%s2184_s3 + $0x730] sm:$0xff]  ;;  %v450_v17 = vld [vmem:[%s2184_s3 + $0x718] sm:$0xff] }
  0xe7   :  { %662 = vmatpush1.msra.mxu0 %v249_v19  ;;  %733 = vmatpush1.msra.mxu1 %v377_v20  ;;  %v321_v18 = vld [vmem:[%s2184_s3 + $0x310] sm:$0xff]  ;;  %v318_v20 = vld [vmem:[%s2184_s3 + $0x2f8] sm:$0xff] }
  0xe8   :  { %663 = vmatprep.subr.mxu0 %v246_v24  ;;  %734 = vmatprep.subr.mxu1 %v374_v27  ;;  %v449_v19 = vld [vmem:[%s2184_s3 + $0x710] sm:$0xff]  ;;  %v446_v24 = vld [vmem:[%s2184_s3 + $0x6f8] sm:$0xff] }
  0xe9   :  { %664 = vmatpush1.msra.mxu0 %v245_v28  ;;  %735 = vmatpush1.msra.mxu1 %v373_v29  ;;  %v317_v27 = vld [vmem:[%s2184_s3 + $0x2f0] sm:$0xff]  ;;  %v314_v29 = vld [vmem:[%s2184_s3 + $0x2d8] sm:$0xff] }
  0xea   :  { %665 = vmatprep.subr.mxu0 %v242_v30  ;;  %736 = vmatprep.subr.mxu1 %v370_v31  ;;  %v445_v28 = vld [vmem:[%s2184_s3 + $0x6f0] sm:$0xff]  ;;  %v442_v30 = vld [vmem:[%s2184_s3 + $0x6d8] sm:$0xff] }
  0xeb   :  { %666 = vmatpush1.msra.mxu0 %v241_v32  ;;  %737 = vmatpush1.msra.mxu1 %v369_v33  ;;  %v313_v31 = vld [vmem:[%s2184_s3 + $0x2d0] sm:$0xff]  ;;  %v310_v33 = vld [vmem:[%s2184_s3 + $0x2b8] sm:$0xff] }
  0xec   :  { %667 = vmatprep.subr.mxu0 %v238_v34  ;;  %738 = vmatprep.subr.mxu1 %v366_v35  ;;  %v441_v32 = vld [vmem:[%s2184_s3 + $0x6d0] sm:$0xff]  ;;  %v438_v34 = vld [vmem:[%s2184_s3 + $0x6b8] sm:$0xff] }
  0xed   :  { %668 = vmatpush1.msra.mxu0 %v237_v36  ;;  %739 = vmatpush1.msra.mxu1 %v365_v37  ;;  %v309_v35 = vld [vmem:[%s2184_s3 + $0x2b0] sm:$0xff]  ;;  %v306_v37 = vld [vmem:[%s2184_s3 + $0x298] sm:$0xff] }
  0xee   :  { %669 = vmatprep.subr.mxu0 %v234_v38  ;;  %740 = vmatprep.subr.mxu1 %v362_v39  ;;  %v437_v36 = vld [vmem:[%s2184_s3 + $0x6b0] sm:$0xff]  ;;  %v434_v38 = vld [vmem:[%s2184_s3 + $0x698] sm:$0xff] }
  0xef   :  { %670 = vmatpush1.msra.mxu0 %v233_v40  ;;  %741 = vmatpush1.msra.mxu1 %v361_v41  ;;  %v305_v39 = vld [vmem:[%s2184_s3 + $0x290] sm:$0xff]  ;;  %v302_v41 = vld [vmem:[%s2184_s3 + $0x278] sm:$0xff] }
  0xf0   :  { %671 = vmatprep.subr.mxu0 %v230_v42  ;;  %742 = vmatprep.subr.mxu1 %v358_v43  ;;  %v433_v40 = vld [vmem:[%s2184_s3 + $0x690] sm:$0xff]  ;;  %v430_v42 = vld [vmem:[%s2184_s3 + $0x678] sm:$0xff] }
  0xf1   :  { %672 = vmatpush1.msra.mxu0 %v229_v44  ;;  %743 = vmatpush1.msra.mxu1 %v357_v45  ;;  %v301_v43 = vld [vmem:[%s2184_s3 + $0x270] sm:$0xff]  ;;  %v298_v45 = vld [vmem:[%s2184_s3 + $0x258] sm:$0xff] }
  0xf2   :  { %673 = vmatprep.subr.mxu0 %v226_v46  ;;  %744 = vmatprep.subr.mxu1 %v354_v49  ;;  %v429_v44 = vld [vmem:[%s2184_s3 + $0x670] sm:$0xff]  ;;  %v426_v46 = vld [vmem:[%s2184_s3 + $0x658] sm:$0xff] }
  0xf3   :  { %674 = vmatpush1.msra.mxu0 %v225_v50  ;;  %745 = vmatpush1.msra.mxu1 %v353_v51  ;;  %v297_v49 = vld [vmem:[%s2184_s3 + $0x250] sm:$0xff]  ;;  %v294_v51 = vld [vmem:[%s2184_s3 + $0x238] sm:$0xff] }
  0xf4   :  { %675 = vmatprep.subr.mxu0 %v350_v52  ;;  %746 = vmatprep.subr.mxu1 %v478_v53  ;;  %v425_v50 = vld [vmem:[%s2184_s3 + $0x650] sm:$0xff]  ;;  %v422_v52 = vld [vmem:[%s2184_s3 + $0x638] sm:$0xff] }
  0xf5   :  { %676 = vmatpush2.msra.mxu0 %v349_v54  ;;  %747 = vmatpush2.msra.mxu1 %v477_v55  ;;  %v293_v53 = vld [vmem:[%s2184_s3 + $0x230] sm:$0xff]  ;;  %v290_v55 = vld [vmem:[%s2184_s3 + $0x218] sm:$0xff] }
  0xf6   :  { %677 = vmatprep.subr.mxu0 %v346_v56  ;;  %748 = vmatprep.subr.mxu1 %v474_v57  ;;  %v421_v54 = vld [vmem:[%s2184_s3 + $0x630] sm:$0xff]  ;;  %v418_v56 = vld [vmem:[%s2184_s3 + $0x618] sm:$0xff] }
  0xf7   :  { %678 = vmatpush2.msra.mxu0 %v345_v58  ;;  %749 = vmatpush2.msra.mxu1 %v473_v59  ;;  %v289_v57 = vld [vmem:[%s2184_s3 + $0x210] sm:$0xff]  ;;  %v828_v59 = vld [vmem:[%s2186_s5 + $0xf8] sm:$0xff] }
  0xf8   :  { %679 = vmatprep.subr.mxu0 %v342_v60  ;;  %750 = vmatprep.subr.mxu1 %v470_v61  ;;  %v417_v58 = vld [vmem:[%s2184_s3 + $0x610] sm:$0xff]  ;;  %v812_v60 = vld [vmem:[%s2186_s5 + $0x78] sm:$0xff] }
  0xf9   :  { %680 = vmatpush2.msra.mxu0 %v341_v62  ;;  %751 = vmatpush2.msra.mxu1 %v469_v63  ;;  %v827_v61 = vld [vmem:[%s2186_s5 + $0xf0] sm:$0xff]  ;;  %v826_v63 = vld [vmem:[%s2186_s5 + $0xe8] sm:$0xff] }
  0xfa   :  { %681 = vmatprep.subr.mxu0 %v338_v0  ;;  %752 = vmatprep.subr.mxu1 %v466_v1  ;;  %v811_v62 = vld [vmem:[%s2186_s5 + $0x70] sm:$0xff]  ;;  %v809_v0 = vld [vmem:[%s2186_s5 + $0x60] sm:$0xff]  ;;  %v824_v1 = vld [vmem:[%s2186_s5 + $0xd8] sm:$0xff] }
  0xfb   :  { %682 = vmatpush2.msra.mxu0 %v337_v2  ;;  %753 = vmatpush2.msra.mxu1 %v465_v3  ;;  %v808_v2 = vld [vmem:[%s2186_s5 + $0x58] sm:$0xff]  ;;  %v823_v3 = vld [vmem:[%s2186_s5 + $0xd0] sm:$0xff] }
  0xfc   :  { %683 = vmatprep.subr.mxu0 %v334_v4  ;;  %754 = vmatprep.subr.mxu1 %v462_v5  ;;  %v807_v4 = vld [vmem:[%s2186_s5 + $0x50] sm:$0xff]  ;;  %v822_v5 = vld [vmem:[%s2186_s5 + $0xc8] sm:$0xff] }
  0xfd   :  { %684 = vmatpush2.msra.mxu0 %v333_v6  ;;  %755 = vmatpush2.msra.mxu1 %v461_v7  ;;  %v860_v6 = vld [vmem:[%s2186_s5 + $0x1f8] sm:$0xff] }
  0xfe   :  { %685 = vmatprep.subr.mxu0 %v330_v8  ;;  %756 = vmatprep.subr.mxu1 %v458_v9  ;;  %v844_v7 = vld [vmem:[%s2186_s5 + $0x178] sm:$0xff]  ;;  %v859_v8 = vld [vmem:[%s2186_s5 + $0x1f0] sm:$0xff]  ;;  %v806_v9 = vld [vmem:[%s2186_s5 + $0x48] sm:$0xff] }
  0xff   :  { %686 = vmatpush2.msra.mxu0 %v329_v10  ;;  %757 = vmatpush2.msra.mxu1 %v457_v11  ;;  %v843_v10 = vld [vmem:[%s2186_s5 + $0x170] sm:$0xff]  ;;  %v821_v11 = vld [vmem:[%s2186_s5 + $0xc0] sm:$0xff] }
 0x100   :  { %687 = vmatprep.subr.mxu0 %v326_v12  ;;  %758 = vmatprep.subr.mxu1 %v454_v13  ;;  %v858_v12 = vld [vmem:[%s2186_s5 + $0x1e8] sm:$0xff]  ;;  %v805_v13 = vld [vmem:[%s2186_s5 + $0x40] sm:$0xff] }
 0x101   :  { %688 = vmatpush2.msra.mxu0 %v325_v14  ;;  %759 = vmatpush2.msra.mxu1 %v453_v15  ;;  %v842_v14 = vld [vmem:[%s2186_s5 + $0x168] sm:$0xff]  ;;  %v820_v15 = vld [vmem:[%s2186_s5 + $0xb8] sm:$0xff] }
 0x102   :  { %689 = vmatprep.subr.mxu0 %v322_v16  ;;  %760 = vmatprep.subr.mxu1 %v450_v17  ;;  %v857_v16 = vld [vmem:[%s2186_s5 + $0x1e0] sm:$0xff]  ;;  %v804_v17 = vld [vmem:[%s2186_s5 + $0x38] sm:$0xff] }
 0x103   :  { %690 = vmatpush2.msra.mxu0 %v321_v18  ;;  %761 = vmatpush2.msra.mxu1 %v449_v19  ;;  %v841_v18 = vld [vmem:[%s2186_s5 + $0x160] sm:$0xff]  ;;  %v819_v19 = vld [vmem:[%s2186_s5 + $0xb0] sm:$0xff] }
 0x104   :  { %691 = vmatprep.subr.mxu0 %v318_v20  ;;  %762 = vmatprep.subr.mxu1 %v446_v24  ;;  %v856_v20 = vld [vmem:[%s2186_s5 + $0x1d8] sm:$0xff]  ;;  %v803_v24 = vld [vmem:[%s2186_s5 + $0x30] sm:$0xff] }
 0x105   :  { %692 = vmatpush2.msra.mxu0 %v317_v27  ;;  %763 = vmatpush2.msra.mxu1 %v445_v28  ;;  %v840_v27 = vld [vmem:[%s2186_s5 + $0x158] sm:$0xff]  ;;  %v818_v28 = vld [vmem:[%s2186_s5 + $0xa8] sm:$0xff] }
 0x106   :  { %693 = vmatprep.subr.mxu0 %v314_v29  ;;  %764 = vmatprep.subr.mxu1 %v442_v30  ;;  %v855_v29 = vld [vmem:[%s2186_s5 + $0x1d0] sm:$0xff]  ;;  %v802_v30 = vld [vmem:[%s2186_s5 + $0x28] sm:$0xff] }
 0x107   :  { %694 = vmatpush2.msra.mxu0 %v313_v31  ;;  %765 = vmatpush2.msra.mxu1 %v441_v32  ;;  %v839_v31 = vld [vmem:[%s2186_s5 + $0x150] sm:$0xff]  ;;  %v817_v32 = vld [vmem:[%s2186_s5 + $0xa0] sm:$0xff] }
 0x108   :  { %695 = vmatprep.subr.mxu0 %v310_v33  ;;  %766 = vmatprep.subr.mxu1 %v438_v34  ;;  %v854_v33 = vld [vmem:[%s2186_s5 + $0x1c8] sm:$0xff]  ;;  %v801_v34 = vld [vmem:[%s2186_s5 + $0x20] sm:$0xff] }
 0x109   :  { %696 = vmatpush2.msra.mxu0 %v309_v35  ;;  %767 = vmatpush2.msra.mxu1 %v437_v36  ;;  %v838_v35 = vld [vmem:[%s2186_s5 + $0x148] sm:$0xff]  ;;  %v816_v36 = vld [vmem:[%s2186_s5 + $0x98] sm:$0xff] }
 0x10a   :  { %697 = vmatprep.subr.mxu0 %v306_v37  ;;  %768 = vmatprep.subr.mxu1 %v434_v38  ;;  %v853_v37 = vld [vmem:[%s2186_s5 + $0x1c0] sm:$0xff]  ;;  %v800_v38 = vld [vmem:[%s2186_s5 + $0x18] sm:$0xff] }
 0x10b   :  { %698 = vmatpush2.msra.mxu0 %v305_v39  ;;  %769 = vmatpush2.msra.mxu1 %v433_v40  ;;  %v837_v39 = vld [vmem:[%s2186_s5 + $0x140] sm:$0xff]  ;;  %v815_v40 = vld [vmem:[%s2186_s5 + $0x90] sm:$0xff] }
 0x10c   :  { %699 = vmatprep.subr.mxu0 %v302_v41  ;;  %770 = vmatprep.subr.mxu1 %v430_v42  ;;  %v852_v41 = vld [vmem:[%s2186_s5 + $0x1b8] sm:$0xff]  ;;  %v799_v42 = vld [vmem:[%s2186_s5 + $0x10] sm:$0xff] }
 0x10d   :  { %700 = vmatpush2.msra.mxu0 %v301_v43  ;;  %771 = vmatpush2.msra.mxu1 %v429_v44  ;;  %v836_v43 = vld [vmem:[%s2186_s5 + $0x138] sm:$0xff]  ;;  %v814_v44 = vld [vmem:[%s2186_s5 + $0x88] sm:$0xff] }
 0x10e   :  { %701 = vmatprep.subr.mxu0 %v298_v45  ;;  %772 = vmatprep.subr.mxu1 %v426_v46  ;;  %v851_v45 = vld [vmem:[%s2186_s5 + $0x1b0] sm:$0xff]  ;;  %v798_v46 = vld [vmem:[%s2186_s5 + $0x8] sm:$0xff] }
 0x10f   :  { %702 = vmatpush2.msra.mxu0 %v297_v49  ;;  %773 = vmatpush2.msra.mxu1 %v425_v50  ;;  %v835_v49 = vld [vmem:[%s2186_s5 + $0x130] sm:$0xff]  ;;  %v813_v50 = vld [vmem:[%s2186_s5 + $0x80] sm:$0xff] }
 0x110   :  { %703 = vmatprep.subr.mxu0 %v294_v51  ;;  %774 = vmatprep.subr.mxu1 %v422_v52  ;;  %v850_v51 = vld [vmem:[%s2186_s5 + $0x1a8] sm:$0xff]  ;;  %v797_v52 = vld [vmem:[%s2186_s5] sm:$0xff] }
 0x111   :  { %704 = vmatpush2.msra.mxu0 %v293_v53  ;;  %775 = vmatpush2.msra.mxu1 %v421_v54  ;;  %v834_v53 = vld [vmem:[%s2186_s5 + $0x128] sm:$0xff]  ;;  %v849_v54 = vld [vmem:[%s2186_s5 + $0x1a0] sm:$0xff] }
 0x112   :  { %705 = vmatprep.subr.mxu0 %v290_v55  ;;  %776 = vmatprep.subr.mxu1 %v418_v56  ;;  %v833_v55 = vld [vmem:[%s2186_s5 + $0x120] sm:$0xff]  ;;  %v848_v56 = vld [vmem:[%s2186_s5 + $0x198] sm:$0xff] }
 0x113   :  { %706 = vmatpush2.msra.mxu0 %v289_v57  ;;  %777 = vmatpush2.msra.mxu1 %v417_v58  ;;  %v832_v57 = vld [vmem:[%s2186_s5 + $0x118] sm:$0xff]  ;;  %v847_v58 = vld [vmem:[%s2186_s5 + $0x190] sm:$0xff] }
 0x114   :  { %708 = vmatmul.mubr.f32.vlgmr.msra.gmra.mxu0 %v1593_v47  ;;  %779 = vmatmul.mubr.f32.vlgmr.msra.gmra.mxu1 %v1595_v48  ;;  %v810_v47 = vld [vmem:[%s2186_s5 + $0x68] sm:$0xff]  ;;  %v825_v48 = vld [vmem:[%s2186_s5 + $0xe0] sm:$0xff] }
 0x115   :  { %1017 = vmatprep.subr.mxu0 %v828_v59  ;;  %1052 = vmatprep.subr.mxu1 %v860_v6  ;;  %v831_v59 = vld [vmem:[%s2186_s5 + $0x110] sm:$0xff] }
 0x116   :  { %1018 = vmatpush3.msra.mxu0 %v812_v60  ;;  %1053 = vmatpush3.msra.mxu1 %v844_v7  ;;  %v846_v60 = vld [vmem:[%s2186_s5 + $0x188] sm:$0xff] }
 0x117   :  { %1019 = vmatprep.subr.mxu0 %v827_v61  ;;  %1054 = vmatprep.subr.mxu1 %v859_v8  ;;  %v830_v61 = vld [vmem:[%s2186_s5 + $0x108] sm:$0xff] }
 0x118   :  { %1020 = vmatpush3.msra.mxu0 %v811_v62  ;;  %1055 = vmatpush3.msra.mxu1 %v843_v10  ;;  %v845_v62 = vld [vmem:[%s2186_s5 + $0x180] sm:$0xff] }
 0x119   :  { %1021 = vmatprep.subr.mxu0 %v826_v63  ;;  %1056 = vmatprep.subr.mxu1 %v858_v12  ;;  %v829_v63 = vld [vmem:[%s2186_s5 + $0x100] sm:$0xff] }
 0x11a   :  { %1022 = vmatpush3.msra.mxu0 %v810_v47  ;;  %1057 = vmatpush3.msra.mxu1 %v842_v14  ;;  %v479_v47 = vld [vmem:[%s2187_s4] sm:$0xf] }
 0x11b   :  { %1023 = vmatprep.subr.mxu0 %v825_v48  ;;  %1058 = vmatprep.subr.mxu1 %v857_v16  ;;  %v484_v48 = vrot.slane %v479_v47, %v47_v22  ;;  %v492_v22 = vrot.slane %v479_v47, %v55_v23 }
 0x11c   :  { %1024 = vmatpush3.msra.mxu0 %v809_v0  ;;  %1059 = vmatpush3.msra.mxu1 %v841_v18  ;;  %v488_v0 = vrot.slane %v479_v47, %v51_v25  ;;  %v496_v25 = vrot.slane %v479_v47, %v59_v26  ;;  %v1016_v26 = vld [vmem:[%s2188_s6] ss:$0 sm:$0xff] }
 0x11d   :  { %1025 = vmatprep.subr.mxu0 %v824_v1  ;;  %1060 = vmatprep.subr.mxu1 %v856_v20 }
 0x11e   :  { %1026 = vmatpush3.msra.mxu0 %v808_v2  ;;  %1061 = vmatpush3.msra.mxu1 %v840_v27 }
 0x11f   :  { %1027 = vmatprep.subr.mxu0 %v823_v3  ;;  %1062 = vmatprep.subr.mxu1 %v855_v29 }
 0x120   :  { %1028 = vmatpush3.msra.mxu0 %v807_v4  ;;  %1063 = vmatpush3.msra.mxu1 %v839_v31 }
 0x121   :  { %1029 = vmatprep.subr.mxu0 %v822_v5  ;;  %1064 = vmatprep.subr.mxu1 %v854_v33 }
 0x122   :  { %1030 = vmatpush3.msra.mxu0 %v806_v9  ;;  %1065 = vmatpush3.msra.mxu1 %v838_v35 }
 0x123   :  { %1031 = vmatprep.subr.mxu0 %v821_v11  ;;  %1066 = vmatprep.subr.mxu1 %v853_v37 }
 0x124   :  { %1032 = vmatpush3.msra.mxu0 %v805_v13  ;;  %1067 = vmatpush3.msra.mxu1 %v837_v39 }
 0x125   :  { %1033 = vmatprep.subr.mxu0 %v820_v15  ;;  %1068 = vmatprep.subr.mxu1 %v852_v41 }
 0x126   :  { %1034 = vmatpush3.msra.mxu0 %v804_v17  ;;  %1069 = vmatpush3.msra.mxu1 %v836_v43 }
 0x127   :  { %1035 = vmatprep.subr.mxu0 %v819_v19  ;;  %1070 = vmatprep.subr.mxu1 %v851_v45 }
 0x128   :  { %1036 = vmatpush3.msra.mxu0 %v803_v24  ;;  %1071 = vmatpush3.msra.mxu1 %v835_v49 }
 0x129   :  { %1037 = vmatprep.subr.mxu0 %v818_v28  ;;  %1072 = vmatprep.subr.mxu1 %v850_v51 }
 0x12a   :  { %1038 = vmatpush3.msra.mxu0 %v802_v30  ;;  %1073 = vmatpush3.msra.mxu1 %v834_v53 }
 0x12b   :  { %1039 = vmatprep.subr.mxu0 %v817_v32  ;;  %1074 = vmatprep.subr.mxu1 %v849_v54 }
 0x12c   :  { %1040 = vmatpush3.msra.mxu0 %v801_v34  ;;  %1075 = vmatpush3.msra.mxu1 %v833_v55 }
 0x12d   :  { %1041 = vmatprep.subr.mxu0 %v816_v36  ;;  %1076 = vmatprep.subr.mxu1 %v848_v56 }
 0x12e   :  { %1042 = vmatpush3.msra.mxu0 %v800_v38  ;;  %1077 = vmatpush3.msra.mxu1 %v832_v57 }
 0x12f   :  { %1043 = vmatprep.subr.mxu0 %v815_v40  ;;  %1078 = vmatprep.subr.mxu1 %v847_v58 }
 0x130   :  { %1044 = vmatpush3.msra.mxu0 %v799_v42  ;;  %1079 = vmatpush3.msra.mxu1 %v831_v59 }
 0x131   :  { %1045 = vmatprep.subr.mxu0 %v814_v44  ;;  %1080 = vmatprep.subr.mxu1 %v846_v60 }
 0x132   :  { %1046 = vmatpush3.msra.mxu0 %v798_v46  ;;  %1081 = vmatpush3.msra.mxu1 %v830_v61 }
 0x133   :  { %1047 = vmatprep.subr.mxu0 %v813_v50  ;;  %1082 = vmatprep.subr.mxu1 %v845_v62 }
 0x134   :  { %1048 = vmatpush3.msra.mxu0 %v797_v52  ;;  %1083 = vmatpush3.msra.mxu1 %v829_v63 }
 0x193   :  { %v567_v1 = vpop.f32.mrf.mxu0  ;;  %v638_v2 = vpop.f32.mrf.mxu1 }
 0x194   :  { %v568_v3 = vadd.f32 %v567_v1, %v484_v48 }
 0x195   :  { %v569_v4 = vpop.f32.mrf.mxu0  ;;  %v640_v7 = vpop.f32.mrf.mxu1 }
 0x196   :  { %v639_v5 = vadd.f32 %v638_v2, %v568_v3  ;;  %v570_v6 = vadd.f32 %v569_v4, %v488_v0 }
 0x198   :  { %v641_v8 = vadd.f32 %v640_v7, %v570_v6  ;;  %v789_v9 = vmul.f32 0.01, %v639_v5  ;;  %vm785_vm5 = vcmp.gt.f32.partialorder %v639_v5, 0.0 }
 0x19a   :  { %v790_v10 = vmul.f32 0.01, %v641_v8  ;;  %vm786_vm6 = vcmp.gt.f32.partialorder %v641_v8, 0.0  ;;  %v793_v12 = vsel %vm785_vm5, %v639_v5, %v789_v9 }
 0x19c   :  { %v794_v11 = vsel %vm786_vm6, %v641_v8, %v790_v10 }
 0x19d   :  { %932 = vmatprep.mubr.f32.mxu0 %v794_v11 }
 0x19e   :  { %933 = vmatmul.mubr.f32.vlgmr.msra.gmra.mxu0 %v793_v12 }
 0x1d4   :  { %v709_v13 = vpop.f32.mrf.mxu0  ;;  %v780_v14 = vpop.f32.mrf.mxu1 }
 0x1d5   :  { %v710_v15 = vadd.f32 %v709_v13, %v492_v22 }
 0x1d6   :  { %v711_v16 = vpop.f32.mrf.mxu0  ;;  %v782_v19 = vpop.f32.mrf.mxu1 }
 0x1d7   :  { %v781_v17 = vadd.f32 %v780_v14, %v710_v15  ;;  %v712_v18 = vadd.f32 %v711_v16, %v496_v25 }
 0x1d9   :  { %v783_v20 = vadd.f32 %v782_v19, %v712_v18  ;;  %v791_v24 = vmul.f32 0.01, %v781_v17  ;;  %vm787_vm7 = vcmp.gt.f32.partialorder %v781_v17, 0.0 }
 0x1db   :  { %v792_v27 = vmul.f32 0.01, %v783_v20  ;;  %vm788_vm8 = vcmp.gt.f32.partialorder %v783_v20, 0.0  ;;  %v795_v29 = vsel %vm787_vm7, %v781_v17, %v791_v24 }
 0x1dd   :  { %v796_v28 = vsel %vm788_vm8, %v783_v20, %v792_v27 }
 0x1de   :  { %1002 = vmatprep.mubr.f32.mxu1 %v796_v28 }
 0x1df   :  { %1003 = vmatmul.mubr.f32.vlgmr.msra.gmra.mxu1 %v795_v29 }
 0x25e   :  { %v1049_v23 = vpop.f32.mrf.mxu0 }
 0x260   :  { %v1050_v30 = vpop.f32.mrf.mxu0 }
 0x261   :  { %v1051_v21 = vadd.f32 %v1050_v30, %v1049_v23 }
 0x263   :  { %v935_v33 = vadd.f32 %v1051_v21, %v1016_v26 }
 0x29f   :  { %v1084_v31 = vpop.f32.mrf.mxu1 }
 0x2a1   :  { %v1085_v32 = vpop.f32.mrf.mxu1 }
 0x2a2   :  { %v1086_v34 = vadd.f32 %v1085_v32, %v1084_v31 }
 0x2a4   :  { %v1005_v35 = vadd.f32 %v1086_v34, %v935_v33 }
 0x2a6   :  { %1009 = vst.msk [vmem:[%s2189_s7] sm:$0x3] %vm1008_vm9, %v1005_v35 }

</bundles_post_ra>
